<compile_context>
chip_gen: v6e
topology: v6e:2x2x1
jax: 0.10.0
libtpu: 0.0.40
codegen_flags: <defaults>
</compile_context>

<pallas_src>
import jax
import jax.numpy as jnp
from jax.experimental import pallas as pl
from jax.experimental.pallas import tpu as pltpu

_LANES = 128          # vreg lane width; last dim of every block
_MAX_ROW_BLOCK = 512  # sublane rows per grid step (64K tokens / ~256 KiB idx block)


def _emb_cat_linear_kernel(t1_ref, t2_ref, idx_ref, o_ref):
    """t1_ref/t2_ref: SMEM (vocab,) f32 fused tables (emb_w @ lin_w.T + lin_b).
    idx_ref: VMEM (BR, 128) int32, lane-dense token indices.
    o_ref:   VMEM (2, BR, 128) f32 — leading axis is the torch.cat(dim=0) half."""
    vocab = t1_ref.shape[0]
    idx = idx_ref[...]                                  # load once, lane-dense

    # Select tree over the tiny vocab. Each branch value is a single SMEM
    # scalar splat (no row gathers, no lane reduction, no broadcast_in_dim of
    # embedding rows). `sel` is computed once and shared by both tables.
    out1 = jnp.full(idx.shape, t1_ref[0], jnp.float32)  # j == 0 (also OOB default)
    out2 = jnp.full(idx.shape, t2_ref[0], jnp.float32)
    for j in range(1, vocab):                           # static unroll, vocab == 10
        sel = idx == j
        out1 = jnp.where(sel, t1_ref[j], out1)
        out2 = jnp.where(sel, t2_ref[j], out2)

    # torch.cat([y1, y2], dim=0): the two halves live on the leading output
    # axis -> both stores are lane-dense and 8-aligned regardless of n % 8.
    o_ref[0, :, :] = out1
    o_ref[1, :, :] = out2


def embedding_cat_linear_forward(x, emb1_w, emb2_w, lin_w, lin_b):
    """x: integer indices of shape (B, ...) with values in [0, vocab).

    Returns float32 of shape (2*B, ..., 1), matching
    linear(torch.cat([embedding1(x), embedding2(x)], dim=0)).
    """
    lead = x.shape
    n = 1
    for d in lead:
        n *= d

    # Fuse the Linear into the tables (done once per call on a 10x10 table;
    # negligible XLA work, removes all per-token dim-wide arithmetic).
    w = lin_w.reshape(-1).astype(jnp.float32)           # (dim,)
    b = lin_b.reshape(()).astype(jnp.float32)           # scalar
    t1 = emb1_w.astype(jnp.float32) @ w + b             # (vocab,)
    t2 = emb2_w.astype(jnp.float32) @ w + b             # (vocab,)

    # Lane-dense index layout: (rows, 128) int32, padded with in-range index 0.
    rows = pl.cdiv(n, _LANES)
    block_rows = min(rows, _MAX_ROW_BLOCK)
    rows_padded = pl.cdiv(rows, block_rows) * block_rows
    pad = rows_padded * _LANES - n
    idx = x.reshape(-1).astype(jnp.int32)
    if pad:
        idx = jnp.pad(idx, (0, pad))
    idx = idx.reshape(rows_padded, _LANES)

    grid = (rows_padded // block_rows,)
    smem = pl.BlockSpec(memory_space=pltpu.MemorySpace.SMEM)

    out = pl.pallas_call(
        _emb_cat_linear_kernel,
        out_shape=jax.ShapeDtypeStruct((2, rows_padded, _LANES), jnp.float32),
        grid=grid,
        in_specs=[
            smem,                                                   # fused table 1
            smem,                                                   # fused table 2
            pl.BlockSpec((block_rows, _LANES), lambda i: (i, 0)),   # indices
        ],
        out_specs=pl.BlockSpec((2, block_rows, _LANES), lambda i: (0, i, 0)),
        compiler_params=pltpu.CompilerParams(
            dimension_semantics=("parallel",)),
    )(t1, t2, idx)

    # (2, rows_padded*128) -> drop lane padding -> cat along dim 0 -> (2B, ..., 1)
    out = out.reshape(2, rows_padded * _LANES)[:, :n]
    return out.reshape((2 * lead[0],) + tuple(lead[1:]) + (1,))


if __name__ == "__main__":
    key = jax.random.PRNGKey(0)
    kx, k1, k2, kw, kb = jax.random.split(key, 5)

    B, S = 2, 8
    vocab, dim = 10, 10

    # Inputs / parameters mirroring the module (deterministic draws):
    x = jax.random.randint(kx, (B, S), 0, vocab, dtype=jnp.int32)
    emb1_w = jax.random.normal(k1, (vocab, dim), jnp.float32)       # embedding1.weight
    emb2_w = jax.random.normal(k2, (vocab, dim), jnp.float32)       # embedding2.weight
    lin_w = 0.1 * jax.random.normal(kw, (1, dim), jnp.float32)      # linear.weight
    lin_b = jax.random.normal(kb, (1,), jnp.float32)                # linear.bias

    out = embedding_cat_linear_forward(x, emb1_w, emb2_w, lin_w, lin_b)
    out = jax.block_until_ready(out)

    # Pure-JAX reference of the PyTorch forward.
    y1 = emb1_w[x]                                  # (B, S, dim)
    y2 = emb2_w[x]                                  # (B, S, dim)
    z = jnp.concatenate([y1, y2], axis=0)           # (2B, S, dim)
    ref = z @ lin_w.T + lin_b                       # (2B, S, 1)

    assert out.shape == ref.shape and out.dtype == jnp.float32
    assert jnp.allclose(out, ref, atol=1e-5, rtol=1e-5), "Pallas kernel mismatch vs reference"

    print("KERNEL_OK")
</pallas_src>

<mosaic_0001>
module attributes {stable_mosaic.version = 11 : i64} {
  func.func @_emb_cat_linear_kernel(%arg0: i32, %arg1: memref<10xf32, #tpu.memory_space<smem>>, %arg2: memref<10xf32, #tpu.memory_space<smem>>, %arg3: memref<1x128xi32, #tpu.memory_space<vmem>>, %arg4: memref<2x1x128xf32, #tpu.memory_space<vmem>>) attributes {dimension_semantics = [#tpu.dimension_semantics<parallel>], iteration_bounds = array<i64: 1>, scalar_prefetch = 0 : i64, scratch_operands = 0 : i64, tpu.core_type = #tpu.core_type<tc>, window_params = [{transform_indices = @transform_0, window_bounds = array<i64: 10>}, {transform_indices = @transform_1, window_bounds = array<i64: 10>}, {transform_indices = @transform_2, window_bounds = array<i64: 1, 128>}, {transform_indices = @transform_3, window_bounds = array<i64: 2, 1, 128>}]} {
    %c0 = arith.constant 0 : index
    %c0_0 = arith.constant 0 : index
    %0 = vector.load %arg3[%c0, %c0_0] : memref<1x128xi32, #tpu.memory_space<vmem>>, vector<1x128xi32>
    %c0_1 = arith.constant 0 : index
    %1 = memref.load %arg1[%c0_1] : memref<10xf32, #tpu.memory_space<smem>>
    %2 = vector.broadcast %1 : f32 to vector<1x128xf32>
    %c0_2 = arith.constant 0 : index
    %3 = memref.load %arg2[%c0_2] : memref<10xf32, #tpu.memory_space<smem>>
    %4 = vector.broadcast %3 : f32 to vector<1x128xf32>
    %c1_i32 = arith.constant 1 : i32
    %5 = vector.broadcast %c1_i32 : i32 to vector<1x128xi32>
    %6 = arith.cmpi eq, %0, %5 : vector<1x128xi32>
    %c1 = arith.constant 1 : index
    %7 = memref.load %arg1[%c1] : memref<10xf32, #tpu.memory_space<smem>>
    %8 = vector.broadcast %7 : f32 to vector<1x128xf32>
    %9 = arith.select %6, %8, %2 : vector<1x128xi1>, vector<1x128xf32>
    %c1_3 = arith.constant 1 : index
    %10 = memref.load %arg2[%c1_3] : memref<10xf32, #tpu.memory_space<smem>>
    %11 = vector.broadcast %10 : f32 to vector<1x128xf32>
    %12 = arith.select %6, %11, %4 : vector<1x128xi1>, vector<1x128xf32>
    %c2_i32 = arith.constant 2 : i32
    %13 = vector.broadcast %c2_i32 : i32 to vector<1x128xi32>
    %14 = arith.cmpi eq, %0, %13 : vector<1x128xi32>
    %c2 = arith.constant 2 : index
    %15 = memref.load %arg1[%c2] : memref<10xf32, #tpu.memory_space<smem>>
    %16 = vector.broadcast %15 : f32 to vector<1x128xf32>
    %17 = arith.select %14, %16, %9 : vector<1x128xi1>, vector<1x128xf32>
    %c2_4 = arith.constant 2 : index
    %18 = memref.load %arg2[%c2_4] : memref<10xf32, #tpu.memory_space<smem>>
    %19 = vector.broadcast %18 : f32 to vector<1x128xf32>
    %20 = arith.select %14, %19, %12 : vector<1x128xi1>, vector<1x128xf32>
    %c3_i32 = arith.constant 3 : i32
    %21 = vector.broadcast %c3_i32 : i32 to vector<1x128xi32>
    %22 = arith.cmpi eq, %0, %21 : vector<1x128xi32>
    %c3 = arith.constant 3 : index
    %23 = memref.load %arg1[%c3] : memref<10xf32, #tpu.memory_space<smem>>
    %24 = vector.broadcast %23 : f32 to vector<1x128xf32>
    %25 = arith.select %22, %24, %17 : vector<1x128xi1>, vector<1x128xf32>
    %c3_5 = arith.constant 3 : index
    %26 = memref.load %arg2[%c3_5] : memref<10xf32, #tpu.memory_space<smem>>
    %27 = vector.broadcast %26 : f32 to vector<1x128xf32>
    %28 = arith.select %22, %27, %20 : vector<1x128xi1>, vector<1x128xf32>
    %c4_i32 = arith.constant 4 : i32
    %29 = vector.broadcast %c4_i32 : i32 to vector<1x128xi32>
    %30 = arith.cmpi eq, %0, %29 : vector<1x128xi32>
    %c4 = arith.constant 4 : index
    %31 = memref.load %arg1[%c4] : memref<10xf32, #tpu.memory_space<smem>>
    %32 = vector.broadcast %31 : f32 to vector<1x128xf32>
    %33 = arith.select %30, %32, %25 : vector<1x128xi1>, vector<1x128xf32>
    %c4_6 = arith.constant 4 : index
    %34 = memref.load %arg2[%c4_6] : memref<10xf32, #tpu.memory_space<smem>>
    %35 = vector.broadcast %34 : f32 to vector<1x128xf32>
    %36 = arith.select %30, %35, %28 : vector<1x128xi1>, vector<1x128xf32>
    %c5_i32 = arith.constant 5 : i32
    %37 = vector.broadcast %c5_i32 : i32 to vector<1x128xi32>
    %38 = arith.cmpi eq, %0, %37 : vector<1x128xi32>
    %c5 = arith.constant 5 : index
    %39 = memref.load %arg1[%c5] : memref<10xf32, #tpu.memory_space<smem>>
    %40 = vector.broadcast %39 : f32 to vector<1x128xf32>
    %41 = arith.select %38, %40, %33 : vector<1x128xi1>, vector<1x128xf32>
    %c5_7 = arith.constant 5 : index
    %42 = memref.load %arg2[%c5_7] : memref<10xf32, #tpu.memory_space<smem>>
    %43 = vector.broadcast %42 : f32 to vector<1x128xf32>
    %44 = arith.select %38, %43, %36 : vector<1x128xi1>, vector<1x128xf32>
    %c6_i32 = arith.constant 6 : i32
    %45 = vector.broadcast %c6_i32 : i32 to vector<1x128xi32>
    %46 = arith.cmpi eq, %0, %45 : vector<1x128xi32>
    %c6 = arith.constant 6 : index
    %47 = memref.load %arg1[%c6] : memref<10xf32, #tpu.memory_space<smem>>
    %48 = vector.broadcast %47 : f32 to vector<1x128xf32>
    %49 = arith.select %46, %48, %41 : vector<1x128xi1>, vector<1x128xf32>
    %c6_8 = arith.constant 6 : index
    %50 = memref.load %arg2[%c6_8] : memref<10xf32, #tpu.memory_space<smem>>
    %51 = vector.broadcast %50 : f32 to vector<1x128xf32>
    %52 = arith.select %46, %51, %44 : vector<1x128xi1>, vector<1x128xf32>
    %c7_i32 = arith.constant 7 : i32
    %53 = vector.broadcast %c7_i32 : i32 to vector<1x128xi32>
    %54 = arith.cmpi eq, %0, %53 : vector<1x128xi32>
    %c7 = arith.constant 7 : index
    %55 = memref.load %arg1[%c7] : memref<10xf32, #tpu.memory_space<smem>>
    %56 = vector.broadcast %55 : f32 to vector<1x128xf32>
    %57 = arith.select %54, %56, %49 : vector<1x128xi1>, vector<1x128xf32>
    %c7_9 = arith.constant 7 : index
    %58 = memref.load %arg2[%c7_9] : memref<10xf32, #tpu.memory_space<smem>>
    %59 = vector.broadcast %58 : f32 to vector<1x128xf32>
    %60 = arith.select %54, %59, %52 : vector<1x128xi1>, vector<1x128xf32>
    %c8_i32 = arith.constant 8 : i32
    %61 = vector.broadcast %c8_i32 : i32 to vector<1x128xi32>
    %62 = arith.cmpi eq, %0, %61 : vector<1x128xi32>
    %c8 = arith.constant 8 : index
    %63 = memref.load %arg1[%c8] : memref<10xf32, #tpu.memory_space<smem>>
    %64 = vector.broadcast %63 : f32 to vector<1x128xf32>
    %65 = arith.select %62, %64, %57 : vector<1x128xi1>, vector<1x128xf32>
    %c8_10 = arith.constant 8 : index
    %66 = memref.load %arg2[%c8_10] : memref<10xf32, #tpu.memory_space<smem>>
    %67 = vector.broadcast %66 : f32 to vector<1x128xf32>
    %68 = arith.select %62, %67, %60 : vector<1x128xi1>, vector<1x128xf32>
    %c9_i32 = arith.constant 9 : i32
    %69 = vector.broadcast %c9_i32 : i32 to vector<1x128xi32>
    %70 = arith.cmpi eq, %0, %69 : vector<1x128xi32>
    %c9 = arith.constant 9 : index
    %71 = memref.load %arg1[%c9] : memref<10xf32, #tpu.memory_space<smem>>
    %72 = vector.broadcast %71 : f32 to vector<1x128xf32>
    %73 = arith.select %70, %72, %65 : vector<1x128xi1>, vector<1x128xf32>
    %c9_11 = arith.constant 9 : index
    %74 = memref.load %arg2[%c9_11] : memref<10xf32, #tpu.memory_space<smem>>
    %75 = vector.broadcast %74 : f32 to vector<1x128xf32>
    %76 = arith.select %70, %75, %68 : vector<1x128xi1>, vector<1x128xf32>
    %c0_12 = arith.constant 0 : index
    %c0_13 = arith.constant 0 : index
    %c0_14 = arith.constant 0 : index
    %77 = vector.load %arg4[%c0_12, %c0_13, %c0_14] : memref<2x1x128xf32, #tpu.memory_space<vmem>>, vector<1x1x128xf32>
    %78 = vector.shape_cast %77 : vector<1x1x128xf32> to vector<1x128xf32>
    %79 = vector.shape_cast %73 : vector<1x128xf32> to vector<1x1x128xf32>
    tpu.vector_store %arg4[%c0_12, %c0_13, %c0_14], %79 {strides = array<i32>} : memref<2x1x128xf32, #tpu.memory_space<vmem>>, vector<1x1x128xf32>,
    %c1_15 = arith.constant 1 : index
    %c0_16 = arith.constant 0 : index
    %c0_17 = arith.constant 0 : index
    %80 = vector.load %arg4[%c1_15, %c0_16, %c0_17] : memref<2x1x128xf32, #tpu.memory_space<vmem>>, vector<1x1x128xf32>
    %81 = vector.shape_cast %80 : vector<1x1x128xf32> to vector<1x128xf32>
    %82 = vector.shape_cast %76 : vector<1x128xf32> to vector<1x1x128xf32>
    tpu.vector_store %arg4[%c1_15, %c0_16, %c0_17], %82 {strides = array<i32>} : memref<2x1x128xf32, #tpu.memory_space<vmem>>, vector<1x1x128xf32>,
    return
  }
  func.func @transform_0(%arg0: i32) -> i32 {
    %c0_i32 = arith.constant 0 : i32
    %c0_i32_0 = arith.constant 0 : i32
    return %c0_i32 : i32
  }
  func.func @transform_1(%arg0: i32) -> i32 {
    %c0_i32 = arith.constant 0 : i32
    %c0_i32_0 = arith.constant 0 : i32
    return %c0_i32 : i32
  }
  func.func @transform_2(%arg0: i32) -> (i32, i32) {
    %c0_i32 = arith.constant 0 : i32
    %c0_i32_0 = arith.constant 0 : i32
    return %arg0, %c0_i32 : i32, i32
  }
  func.func @transform_3(%arg0: i32) -> (i32, i32, i32) {
    %c0_i32 = arith.constant 0 : i32
    %c0_i32_0 = arith.constant 0 : i32
    %c0_i32_1 = arith.constant 0 : i32
    return %c0_i32, %arg0, %c0_i32_0 : i32, i32, i32
  }
}

</mosaic_0001>

<bundles_post_ra>
// kernel: tpu_custom_call.1
= control target key start
LH: loop header
LB: loop body
LE: loop exit
PB: predicated region body
PF: predicated region fallthrough
CT: control target
= control target key end

     0   :  { %8 = vsyncpa [#allocation4], 0  ;;  %s280_s0 = inlined_call_operand.hbm [shape: f32[10], index: 0, kind: input, shape index: {}]   ;;  %s281_s1 = inlined_call_operand.vmem [shape: f32[10], index: 1, kind: input, shape index: {}]   ;;  %s282_s2 = inlined_call_operand.vmem [shape: s32[1,128], index: 2, kind: input, shape index: {}]   ;;  %s283_s3 = inlined_call_operand.hbm [shape: f32[2,1,128], index: 3, kind: output, shape index: {}]  }
   0x1   :  { %9 = vsyncpa [#allocation5], 0 }
   0x2   :  { %10 = vsyncpa [#allocation3], 0  ;;  %s25_s14 = sshll.u32 %s281_s1, 4  ;;  %s196_s15 = smov [#allocation2]   ;;  %s26_s14 = int_to_ptr.vmem [resolvable:$true] %s25_s14 }
   0x3   :  { %18 = dma.hbm_to_smem %s280_s0, 16, %s196_s15, [#allocation4]  }
   0x4   :  { %s158_s18 = scalar_lea.vmem %s26_s14, 16  ;;  %p163_p1 = scmp.lt.s32.totalorder %s26_s14, %s26_s14 }
   0x5   :  { %p159_p0 = scmp.ne.s32.totalorder %s26_s14, %s158_s18  ;;  %p164_p2 = scmp.lt.s32.totalorder %s158_s18, %s158_s18 }
   0x7   :  { %p165_p3 = por %p164_p2, %p163_p1 }
   0x9   :  { %p166_p4 = pnand %p165_p3, %p159_p0 }
   0xb   :  { %169 = shalt.err (!%p166_p4)
}
   0xc   :  { %s197_s19 = smov [#allocation6]  }
   0xd   :  { %28 = dma.vmem_to_smem %s26_s14, 16, %s197_s19, [#allocation5]  }
   0xe   :  { %190 = dma.done.wait [#allocation4], 16  }
   0xf   :  { %191 = vsyncadd [#allocation4], 4294967280 }
  0x10   :  { %192 = dma.done.wait [#allocation5], 16  }
  0x11   :  { %193 = vsyncadd [#allocation5], 4294967280 }
  0x12   :  { %37 = sfence }
  0x13   :  { %s39_s1 = sld [smem:[#allocation2]]  ;;  %v230_v0 = vld [vmem:[%s282_s2] sm:$0x1]  ;;  %s198_s12 = smov [#allocation7]  }
  0x14   :  { %s127_s20 = sld [smem:[#allocation2 + $0x1]]  ;;  %vm43_vm0 = vcmp.eq.s32.totalorder %v230_v0, 1  ;;  %vm50_vm1 = vcmp.eq.s32.totalorder %v230_v0, 2  ;;  %vm57_vm2 = vcmp.eq.s32.totalorder %v230_v0, 3  ;;  %vm64_vm3 = vcmp.eq.s32.totalorder %v230_v0, 4  ;;  %s114_s13 = sshll.u32 %s198_s12, 4  ;;  %s115_s13 = int_to_ptr.vmem [resolvable:$true] %s114_s13 }
  0x15   :  { %s129_s0 = sld [smem:[#allocation2 + $0x2]]  ;;  %vm71_vm4 = vcmp.eq.s32.totalorder %v230_v0, 5  ;;  %vm78_vm5 = vcmp.eq.s32.totalorder %v230_v0, 6  ;;  %vm85_vm6 = vcmp.eq.s32.totalorder %v230_v0, 7  ;;  %vm92_vm7 = vcmp.eq.s32.totalorder %v230_v0, 8  ;;  %s170_s14 = scalar_lea.vmem %s115_s13, 32 }
  0x16   :  { %s131_s23 = sld [smem:[#allocation2 + $0x3]]  ;;  %vm99_vm8 = vcmp.eq.s32.totalorder %v230_v0, 9  ;;  %p171_p5 = scmp.ne.s32.totalorder %s115_s13, %s170_s14 }
  0x17   :  { %s133_s24 = sld [smem:[#allocation2 + $0x4]]  ;;  %p175_p6 = scmp.lt.s32.totalorder %s115_s13, %s115_s13 }
  0x18   :  { %s135_s25 = sld [smem:[#allocation2 + $0x5]]  ;;  %p176_p7 = scmp.lt.s32.totalorder %s170_s14, %s170_s14 }
  0x19   :  { %v40_v1 = vstv %s39_s1  ;;  %s137_s26 = sld [smem:[#allocation2 + $0x6]] }
  0x1a   :  { %v45_v2 = vstv %s127_s20  ;;  %s139_s27 = sld [smem:[#allocation2 + $0x7]]  ;;  %p177_p8 = por %p176_p7, %p175_p6 }
  0x1b   :  { %v46_v3 = vsel %vm43_vm0, %v45_v2, %v40_v1  ;;  %v52_v4 = vstv %s129_s0  ;;  %s141_s2 = sld [smem:[#allocation2 + $0x8]] }
  0x1c   :  { %v53_v5 = vsel %vm50_vm1, %v52_v4, %v46_v3  ;;  %v59_v6 = vstv %s131_s23  ;;  %s143_s28 = sld [smem:[#allocation2 + $0x9]]  ;;  %p178_p9 = pnand %p177_p8, %p171_p5 }
  0x1d   :  { %v60_v7 = vsel %vm57_vm2, %v59_v6, %v53_v5  ;;  %v66_v8 = vstv %s133_s24  ;;  %s41_s29 = sld [smem:[#allocation6]] }
  0x1e   :  { %v67_v9 = vsel %vm64_vm3, %v66_v8, %v60_v7  ;;  %v73_v10 = vstv %s135_s25  ;;  %s128_s30 = sld [smem:[#allocation6 + $0x1]] }
  0x1f   :  { %v74_v11 = vsel %vm71_vm4, %v73_v10, %v67_v9  ;;  %v80_v12 = vstv %s137_s26  ;;  %s130_s4 = sld [smem:[#allocation6 + $0x2]] }
  0x20   :  { %v81_v13 = vsel %vm78_vm5, %v80_v12, %v74_v11  ;;  %v87_v14 = vstv %s139_s27  ;;  %s132_s5 = sld [smem:[#allocation6 + $0x3]] }
  0x21   :  { %v88_v15 = vsel %vm85_vm6, %v87_v14, %v81_v13  ;;  %v94_v16 = vstv %s141_s2  ;;  %s134_s6 = sld [smem:[#allocation6 + $0x4]] }
  0x22   :  { %v95_v17 = vsel %vm92_vm7, %v94_v16, %v88_v15  ;;  %v101_v18 = vstv %s143_s28  ;;  %s136_s7 = sld [smem:[#allocation6 + $0x5]] }
  0x23   :  { %v102_v19 = vsel %vm99_vm8, %v101_v18, %v95_v17  ;;  %v42_v20 = vstv %s41_s29  ;;  %s138_s8 = sld [smem:[#allocation6 + $0x6]] }
  0x24   :  { %106 = vst [vmem:[#allocation7] sm:$0x1] %v102_v19  ;;  %v48_v21 = vstv %s128_s30  ;;  %s140_s9 = sld [smem:[#allocation6 + $0x7]] }
  0x25   :  { %v49_v22 = vsel %vm43_vm0, %v48_v21, %v42_v20  ;;  %v55_v23 = vstv %s130_s4  ;;  %s142_s10 = sld [smem:[#allocation6 + $0x8]] }
  0x26   :  { %v56_v24 = vsel %vm50_vm1, %v55_v23, %v49_v22  ;;  %v62_v25 = vstv %s132_s5  ;;  %s144_s11 = sld [smem:[#allocation6 + $0x9]] }
  0x27   :  { %v63_v26 = vsel %vm57_vm2, %v62_v25, %v56_v24  ;;  %v69_v27 = vstv %s134_s6 }
  0x28   :  { %v70_v28 = vsel %vm64_vm3, %v69_v27, %v63_v26  ;;  %v76_v29 = vstv %s136_s7 }
  0x29   :  { %v77_v30 = vsel %vm71_vm4, %v76_v29, %v70_v28  ;;  %v83_v31 = vstv %s138_s8 }
  0x2a   :  { %v84_v32 = vsel %vm78_vm5, %v83_v31, %v77_v30  ;;  %v90_v33 = vstv %s140_s9 }
  0x2b   :  { %v91_v34 = vsel %vm85_vm6, %v90_v33, %v84_v32  ;;  %v97_v35 = vstv %s142_s10 }
  0x2c   :  { %v98_v36 = vsel %vm92_vm7, %v97_v35, %v91_v34  ;;  %v104_v37 = vstv %s144_s11 }
  0x2d   :  { %v105_v38 = vsel %vm99_vm8, %v104_v37, %v98_v36 }
  0x2e   :  { %108 = vst [vmem:[#allocation7 + $0x1] sm:$0x1] %v105_v38 }
  0x2f   :  { %181 = shalt.err (!%p178_p9)
}
  0x30   :  { %s199_s15 = smov 16   ;;  %s200_s16 = smov 1  }
  0x31   :  { %120 = dma.vmem_to_hbm [thread:$0]  %s115_s13, 32, %s283_s3, [#allocation3], %s199_s15, %s199_s15, %s200_s16  }
  0x32   :  { %194 = dma.done.wait [#allocation3], 32  }
  0x33   :  { %195 = vsyncadd [#allocation3], 4294967264 }
  0x34   :  { %124 = vsyncpa [#allocation3], 1 }
  0x35   :  { %125 = vsyncpa [#allocation4], 1 }
  0x36   :  { %126 = vsyncpa [#allocation5], 1 }

</bundles_post_ra>
